<compile_context>
chip_gen: v5e
topology: v5e:2x2
jax: 0.10.0
libtpu: 0.0.40
codegen_flags: <defaults>
</compile_context>

<pallas_src>
import jax
import jax.numpy as jnp
from jax.experimental import pallas as pl
from jax.experimental.pallas import tpu as pltpu

LN_EPS = 1e-12  # espnet/funasr LayerNorm uses eps=1e-12


def ffn_kernel(x_ref, w1_ref, p_ref, w2_ref, o_ref):
    # x_ref: (TM, idim) input-dtype   w1_ref: (idim, H) bf16   p_ref: (3, H) f32
    # w2_ref: (H, odim) bf16          o_ref: (TM, odim) input-dtype

    # ---- w_1(x): bf16 x bf16 matmul with f32 accumulation on the MXU ----
    x = x_ref[...].astype(w1_ref.dtype)          # per-tile cast only (cheap VPU work)
    h = jnp.dot(x, w1_ref[...], preferred_element_type=jnp.float32)

    p = p_ref[...]                               # (3, H) f32: [b1; gamma; beta]
    h = jnp.maximum(h + p[0:1, :], 0.0)          # bias + ReLU in f32

    # dropout: identity in eval mode

    # ---- LayerNorm over the hidden dim (f32) ----
    inv_h = 1.0 / h.shape[-1]                    # static python constant
    mean = jnp.sum(h, axis=-1, keepdims=True) * inv_h
    cent = h - mean
    var = jnp.sum(cent * cent, axis=-1, keepdims=True) * inv_h
    scale = p[1:2, :] * jax.lax.rsqrt(var + LN_EPS)   # gamma folded into the scale
    hn = cent * scale + p[2:3, :]

    # ---- w_2 (no bias): cast the normalized activations to bf16 for the MXU ----
    out = jnp.dot(hn.astype(w2_ref.dtype), w2_ref[...],
                  preferred_element_type=jnp.float32)
    o_ref[...] = out.astype(o_ref.dtype)


def _round_up(n, m):
    return ((n + m - 1) // m) * m


def positionwise_ffn_decoder_sanm(x, w1, b1, gamma, beta, w2, *,
                                  tile_m=256, mm_dtype=jnp.bfloat16):
    """x: (B, T, idim) -> (B, T, odim), odim = w2.shape[1]."""
    B, T, idim = x.shape
    hidden = w1.shape[1]
    odim = w2.shape[1]

    rows = B * T
    # Effective row tile: large for throughput, but never pad a tiny input up to 256 rows.
    tm = min(tile_m, _round_up(rows, 8))
    rows_p = _round_up(rows, tm)

    x2 = x.reshape(rows, idim)
    if rows_p != rows:
        # Padded rows are harmless (ReLU/LN of constants stay finite) and trimmed below.
        x2 = jnp.pad(x2, ((0, rows_p - rows), (0, 0)))

    # Weights cast to bf16 once in the wrapper (MXU-native inputs, f32 accumulation).
    w1c = w1.astype(mm_dtype)
    w2c = w2.astype(mm_dtype)
    # Pack the three 1-D parameters into one (3, H) f32 array -> single BlockSpec / DMA.
    params = jnp.stack([b1, gamma, beta], axis=0).astype(jnp.float32)

    grid = (rows_p // tm,)

    # VMEM budget: double-buffered x/out tiles + (double-buffered) resident weights/params
    # + f32 hidden intermediate; clamp to [32 MiB, 64 MiB] (v7x-safe).
    wbytes = jnp.dtype(mm_dtype).itemsize
    vmem_need = (2 * tm * idim * x2.dtype.itemsize
                 + 2 * tm * odim * x.dtype.itemsize
                 + 2 * (idim * hidden + hidden * odim) * wbytes
                 + 2 * 3 * hidden * 4
                 + tm * hidden * 4)
    vmem_limit = int(min(max(vmem_need + (8 << 20), 32 << 20), 64 << 20))

    out = pl.pallas_call(
        ffn_kernel,
        out_shape=jax.ShapeDtypeStruct((rows_p, odim), x.dtype),
        grid_spec=pltpu.PrefetchScalarGridSpec(
            num_scalar_prefetch=0,
            grid=grid,
            in_specs=[
                pl.BlockSpec((tm, idim), lambda i: (i, 0)),        # x row tile
                pl.BlockSpec((idim, hidden), lambda i: (0, 0)),    # W1 (resident, bf16)
                pl.BlockSpec((3, hidden), lambda i: (0, 0)),       # [b1; gamma; beta] (f32)
                pl.BlockSpec((hidden, odim), lambda i: (0, 0)),    # W2 (resident, bf16)
            ],
            out_specs=pl.BlockSpec((tm, odim), lambda i: (i, 0)),
        ),
        compiler_params=pltpu.CompilerParams(
            dimension_semantics=("parallel",),     # megacore sharding across row tiles
            vmem_limit_bytes=vmem_limit,
        ),
    )(x2, w1c, params, w2c)

    out = out[:rows]
    return out.reshape(B, T, odim)


def reference(x, w1, b1, gamma, beta, w2, mm_dtype=None):
    """Pure-JAX reference. mm_dtype=None -> exact f32 module semantics;
    mm_dtype=bf16 -> same matmul precision policy as the kernel."""
    xd = x if mm_dtype is None else x.astype(mm_dtype)
    w1d = w1 if mm_dtype is None else w1.astype(mm_dtype)
    w2d = w2 if mm_dtype is None else w2.astype(mm_dtype)
    h = jnp.einsum("btd,dh->bth", xd, w1d,
                   preferred_element_type=jnp.float32) + b1
    h = jnp.maximum(h, 0.0)
    mean = jnp.mean(h, axis=-1, keepdims=True)
    var = jnp.mean((h - mean) ** 2, axis=-1, keepdims=True)
    hn = (h - mean) * jax.lax.rsqrt(var + LN_EPS) * gamma + beta
    out = jnp.einsum("bth,ho->bto", hn.astype(w2d.dtype), w2d,
                     preferred_element_type=jnp.float32)
    return out.astype(x.dtype)


if __name__ == "__main__":
    # Small shapes consistent with the module (lane-friendly: idim/odim/H multiples of 128).
    B, T, idim, hidden = 2, 8, 128, 256
    adim = None
    odim = idim if adim is None else adim

    key = jax.random.PRNGKey(0)
    kx, k1, kb, kg, kbe, k2 = jax.random.split(key, 6)

    x = jax.random.normal(kx, (B, T, idim), dtype=jnp.float32)
    w1 = jax.random.normal(k1, (idim, hidden), dtype=jnp.float32) * 0.1
    b1 = jax.random.normal(kb, (hidden,), dtype=jnp.float32) * 0.1
    gamma = 1.0 + 0.05 * jax.random.normal(kg, (hidden,), dtype=jnp.float32)
    beta = 0.05 * jax.random.normal(kbe, (hidden,), dtype=jnp.float32)
    w2 = jax.random.normal(k2, (hidden, odim), dtype=jnp.float32) * 0.1

    y = positionwise_ffn_decoder_sanm(x, w1, b1, gamma, beta, w2)
    y = jax.block_until_ready(y)
    assert y.shape == (B, T, odim)

    # Tight check vs a reference using the same precision policy (bf16 matmuls, f32 acc/LN).
    y_same = reference(x, w1, b1, gamma, beta, w2, mm_dtype=jnp.bfloat16)
    assert jnp.allclose(y, y_same, atol=2e-3, rtol=2e-3), "mismatch vs same-precision reference"

    # Looser check vs exact f32 module semantics (bf16 matmul rounding is the only delta).
    y_f32 = reference(x, w1, b1, gamma, beta, w2)
    assert jnp.allclose(y, y_f32, atol=1e-1, rtol=1e-1), "mismatch vs f32 reference"

    print("KERNEL_OK")
</pallas_src>

<mosaic_0001>
module attributes {stable_mosaic.version = 11 : i64} {
  func.func @ffn_kernel(%arg0: i32, %arg1: memref<16x128xf32, #tpu.memory_space<vmem>>, %arg2: memref<128x256xbf16, #tpu.memory_space<vmem>>, %arg3: memref<3x256xf32, #tpu.memory_space<vmem>>, %arg4: memref<256x128xbf16, #tpu.memory_space<vmem>>, %arg5: memref<16x128xf32, #tpu.memory_space<vmem>>) attributes {dimension_semantics = [#tpu.dimension_semantics<parallel>], iteration_bounds = array<i64: 1>, scalar_prefetch = 0 : i64, scratch_operands = 0 : i64, tpu.core_type = #tpu.core_type<tc>, window_params = [{transform_indices = @transform_0, window_bounds = array<i64: 16, 128>}, {pipeline_mode = #tpu.pipeline_mode<synchronous>, transform_indices = @transform_1, window_bounds = array<i64: 128, 256>}, {pipeline_mode = #tpu.pipeline_mode<synchronous>, transform_indices = @transform_2, window_bounds = array<i64: 3, 256>}, {pipeline_mode = #tpu.pipeline_mode<synchronous>, transform_indices = @transform_3, window_bounds = array<i64: 256, 128>}, {transform_indices = @transform_4, window_bounds = array<i64: 16, 128>}]} {
    %c0 = arith.constant 0 : index
    %c0_0 = arith.constant 0 : index
    %0 = vector.load %arg1[%c0, %c0_0] : memref<16x128xf32, #tpu.memory_space<vmem>>, vector<16x128xf32>
    %1 = arith.truncf %0 : vector<16x128xf32> to vector<16x128xbf16>
    %c0_1 = arith.constant 0 : index
    %c0_2 = arith.constant 0 : index
    %2 = vector.load %arg2[%c0_1, %c0_2] : memref<128x256xbf16, #tpu.memory_space<vmem>>, vector<128x256xbf16>
    %cst = arith.constant dense<0.000000e+00> : vector<16x256xf32>
    %3 = tpu.matmul %1, %2, %cst {dimension_numbers = #tpu.dot_dimension_numbers<[1], [0], [0], [1], [0, 0, 1, 1], [], []>} : vector<16x128xbf16>, vector<128x256xbf16>, vector<16x256xf32> -> vector<16x256xf32>
    %c0_3 = arith.constant 0 : index
    %c0_4 = arith.constant 0 : index
    %4 = vector.load %arg3[%c0_3, %c0_4] : memref<3x256xf32, #tpu.memory_space<vmem>>, vector<3x256xf32>
    %5 = vector.extract_strided_slice %4 {offsets = [0, 0], sizes = [1, 256], strides = [1, 1]} : vector<3x256xf32> to vector<1x256xf32>
    %6 = vector.broadcast %5 : vector<1x256xf32> to vector<16x256xf32>
    %7 = arith.addf %3, %6 : vector<16x256xf32>
    %cst_5 = arith.constant 0.000000e+00 : f32
    %8 = vector.broadcast %cst_5 : f32 to vector<16x256xf32>
    %9 = arith.maximumf %7, %8 : vector<16x256xf32>
    %cst_6 = arith.constant dense<0.000000e+00> : vector<16xf32>
    %10 = vector.multi_reduction <add>, %9, %cst_6 [1] : vector<16x256xf32> to vector<16xf32>
    %11 = vector.shape_cast %10 : vector<16xf32> to vector<16x1xf32>
    %cst_7 = arith.constant 3.906250e-03 : f32
    %12 = vector.broadcast %cst_7 : f32 to vector<16x1xf32>
    %13 = arith.mulf %11, %12 : vector<16x1xf32>
    %14 = vector.broadcast %13 : vector<16x1xf32> to vector<16x256xf32>
    %15 = arith.subf %9, %14 : vector<16x256xf32>
    %16 = arith.mulf %15, %15 : vector<16x256xf32>
    %cst_8 = arith.constant dense<0.000000e+00> : vector<16xf32>
    %17 = vector.multi_reduction <add>, %16, %cst_8 [1] : vector<16x256xf32> to vector<16xf32>
    %18 = vector.shape_cast %17 : vector<16xf32> to vector<16x1xf32>
    %cst_9 = arith.constant 3.906250e-03 : f32
    %19 = vector.broadcast %cst_9 : f32 to vector<16x1xf32>
    %20 = arith.mulf %18, %19 : vector<16x1xf32>
    %21 = vector.extract_strided_slice %4 {offsets = [1, 0], sizes = [1, 256], strides = [1, 1]} : vector<3x256xf32> to vector<1x256xf32>
    %cst_10 = arith.constant 9.99999996E-13 : f32
    %22 = vector.broadcast %cst_10 : f32 to vector<16x1xf32>
    %23 = arith.addf %20, %22 : vector<16x1xf32>
    %24 = math.rsqrt %23 : vector<16x1xf32>
    %25 = vector.broadcast %21 : vector<1x256xf32> to vector<16x256xf32>
    %26 = vector.broadcast %24 : vector<16x1xf32> to vector<16x256xf32>
    %27 = arith.mulf %25, %26 : vector<16x256xf32>
    %28 = arith.mulf %15, %27 : vector<16x256xf32>
    %29 = vector.extract_strided_slice %4 {offsets = [2, 0], sizes = [1, 256], strides = [1, 1]} : vector<3x256xf32> to vector<1x256xf32>
    %30 = vector.broadcast %29 : vector<1x256xf32> to vector<16x256xf32>
    %31 = arith.addf %28, %30 : vector<16x256xf32>
    %32 = arith.truncf %31 : vector<16x256xf32> to vector<16x256xbf16>
    %c0_11 = arith.constant 0 : index
    %c0_12 = arith.constant 0 : index
    %33 = vector.load %arg4[%c0_11, %c0_12] : memref<256x128xbf16, #tpu.memory_space<vmem>>, vector<256x128xbf16>
    %cst_13 = arith.constant dense<0.000000e+00> : vector<16x128xf32>
    %34 = tpu.matmul %32, %33, %cst_13 {dimension_numbers = #tpu.dot_dimension_numbers<[1], [0], [0], [1], [0, 0, 1, 1], [], []>} : vector<16x256xbf16>, vector<256x128xbf16>, vector<16x128xf32> -> vector<16x128xf32>
    %c0_14 = arith.constant 0 : index
    %c0_15 = arith.constant 0 : index
    %35 = vector.load %arg5[%c0_14, %c0_15] : memref<16x128xf32, #tpu.memory_space<vmem>>, vector<16x128xf32>
    tpu.vector_store %arg5[%c0_14, %c0_15], %34 {strides = array<i32>} : memref<16x128xf32, #tpu.memory_space<vmem>>, vector<16x128xf32>,
    return
  }
  func.func @transform_0(%arg0: i32) -> (i32, i32) {
    %c0_i32 = arith.constant 0 : i32
    %c0_i32_0 = arith.constant 0 : i32
    return %arg0, %c0_i32 : i32, i32
  }
  func.func @transform_1(%arg0: i32) -> (i32, i32) {
    %c0_i32 = arith.constant 0 : i32
    %c0_i32_0 = arith.constant 0 : i32
    %c0_i32_1 = arith.constant 0 : i32
    return %c0_i32, %c0_i32_0 : i32, i32
  }
  func.func @transform_2(%arg0: i32) -> (i32, i32) {
    %c0_i32 = arith.constant 0 : i32
    %c0_i32_0 = arith.constant 0 : i32
    %c0_i32_1 = arith.constant 0 : i32
    return %c0_i32, %c0_i32_0 : i32, i32
  }
  func.func @transform_3(%arg0: i32) -> (i32, i32) {
    %c0_i32 = arith.constant 0 : i32
    %c0_i32_0 = arith.constant 0 : i32
    %c0_i32_1 = arith.constant 0 : i32
    return %c0_i32, %c0_i32_0 : i32, i32
  }
  func.func @transform_4(%arg0: i32) -> (i32, i32) {
    %c0_i32 = arith.constant 0 : i32
    %c0_i32_0 = arith.constant 0 : i32
    return %arg0, %c0_i32 : i32, i32
  }
}

</mosaic_0001>

<bundles_post_ra>
// kernel: tpu_custom_call.1
= control target key start
LH: loop header
LB: loop body
LE: loop exit
PB: predicated region body
PF: predicated region fallthrough
CT: control target
= control target key end

     0   :  { %9 = vsyncpa [#allocation3], 0  ;;  %s856_s0 = inlined_call_operand.hbm [shape: f32[16,128], index: 0, kind: input, shape index: {}]   ;;  %s857_s1 = inlined_call_operand.hbm [shape: bf16[128,256], index: 1, kind: input, shape index: {}]   ;;  %s858_s2 = inlined_call_operand.hbm [shape: f32[3,256], index: 2, kind: input, shape index: {}]   ;;  %s859_s3 = inlined_call_operand.hbm [shape: bf16[256,128], index: 3, kind: input, shape index: {}]   ;;  %s860_s4 = inlined_call_operand.hbm [shape: f32[16,128], index: 4, kind: output, shape index: {}]  }
   0x1   :  { %10 = vsyncpa [#allocation6], 0 }
   0x2   :  { %11 = vsyncpa [#allocation9], 0 }
   0x3   :  { %12 = vsyncpa [#allocation4], 0  ;;  %s30_s17 = sshll.u32 %s857_s1, 4  ;;  %s770_s18 = smov [#allocation5]   ;;  %s31_s17 = int_to_ptr.hbm [resolvable:$true] %s30_s17 }
   0x4   :  { %s32_s19 = sshll.u32 %s770_s18, 4  ;;  %s17_s22 = sshll.u32 %s856_s0, 4  ;;  %s33_s19 = int_to_ptr.vmem [resolvable:$true] %s32_s19  ;;  %s18_s22 = int_to_ptr.hbm [resolvable:$true] %s17_s22 }
   0x5   :  { %s771_s23 = smov 128   ;;  %s772_s24 = smov 8  }
   0x6   :  { %38 = dma.hbm_to_vmem [thread:$0]  %s31_s17, 2048, %s33_s19, [#allocation6], %s771_s23, %s771_s23, %s772_s24  }
   0x7   :  { %s773_s25 = smov [#allocation2]   ;;  %s44_s1 = sshll.u32 %s858_s2, 4  ;;  %s45_s1 = int_to_ptr.hbm [resolvable:$true] %s44_s1 }
   0x8   :  { %s19_s26 = sshll.u32 %s773_s25, 4  ;;  %s54_s30 = sshll.u32 %s859_s3, 4  ;;  %s20_s26 = int_to_ptr.vmem [resolvable:$true] %s19_s26  ;;  %s55_s30 = int_to_ptr.hbm [resolvable:$true] %s54_s30 }
   0x9   :  { %25 = dma.hbm_to_vmem [thread:$0]  %s18_s22, 256, %s20_s26, [#allocation3], %s771_s23, %s771_s23, %s772_s24  }
   0xa   :  { %s774_s5 = smov [#allocation7]   ;;  %s775_s7 = smov [#allocation8]  }
   0xb   :  { %s46_s6 = sshll.u32 %s774_s5, 4  ;;  %s56_s8 = sshll.u32 %s775_s7, 4  ;;  %s47_s6 = int_to_ptr.vmem [resolvable:$true] %s46_s6  ;;  %s57_s8 = int_to_ptr.vmem [resolvable:$true] %s56_s8 }
   0xc   :  { %49 = dma.hbm_to_vmem [thread:$0]  %s45_s1, 128, %s47_s6, [#allocation6]  }
   0xd   :  { %s776_s9 = smov 64   ;;  %s777_s2 = smov 4  }
   0xe   :  { %62 = dma.hbm_to_vmem [thread:$0]  %s55_s30, 2048, %s57_s8, [#allocation9], %s776_s9, %s776_s9, %s777_s2  }
   0xf   :  { %762 = dma.done.wait [#allocation3], 256  }
  0x10   :  { %763 = vsyncadd [#allocation3], 4294967040 }
  0x11   :  { %764 = dma.done.wait [#allocation6], 2176  }
  0x12   :  { %765 = vsyncadd [#allocation6], 4294965120 }
  0x13   :  { %766 = dma.done.wait [#allocation9], 2048  }
  0x14   :  { %767 = vsyncadd [#allocation9], 4294965248  ;;  %v527_v0 = vld [vmem:[#allocation5 + $0x70] sm:$0xf]  ;;  %v612_v1 = vld [vmem:[#allocation5 + $0x74] sm:$0xf0] }
  0x15   :  { %v611_v2 = vld [vmem:[#allocation5 + $0x74] sm:$0xf]  ;;  %v528_v3 = vor.u32 %v612_v1, %v527_v0  ;;  %v529_v4 = vld [vmem:[#allocation5 + $0x78] sm:$0xf0]  ;;  %v519_v5 = vld [vmem:[#allocation5 + $0x60] sm:$0xf] }
  0x16   :  { %v610_v6 = vld [vmem:[#allocation5 + $0x64] sm:$0xf0]  ;;  %v532_v7 = vor.u32 %v611_v2, %v529_v4  ;;  %v609_v8 = vld [vmem:[#allocation5 + $0x64] sm:$0xf]  ;;  %v521_v9 = vld [vmem:[#allocation5 + $0x68] sm:$0xf0] }
  0x17   :  { %186 = vmatpush.bf16.msra.mxu0 %v528_v3  ;;  %v520_v10 = vor.u32 %v610_v6, %v519_v5  ;;  %v524_v11 = vor.u32 %v609_v8, %v521_v9  ;;  %v511_v12 = vld [vmem:[#allocation5 + $0x50] sm:$0xf]  ;;  %v608_v13 = vld [vmem:[#allocation5 + $0x54] sm:$0xf0]  ;;  %v607_v14 = vld [vmem:[#allocation5 + $0x54] sm:$0xf] }
  0x18   :  { %200 = vmatpush.bf16.msra.mxu1 %v532_v7  ;;  %v513_v15 = vld [vmem:[#allocation5 + $0x58] sm:$0xf0]  ;;  %v512_v16 = vor.u32 %v608_v13, %v511_v12  ;;  %v503_v18 = vld [vmem:[#allocation5 + $0x40] sm:$0xf]  ;;  %v606_v19 = vld [vmem:[#allocation5 + $0x44] sm:$0xf0] }
  0x19   :  { %v516_v17 = vor.u32 %v607_v14, %v513_v15  ;;  %v605_v20 = vld [vmem:[#allocation5 + $0x44] sm:$0xf]  ;;  %v505_v21 = vld [vmem:[#allocation5 + $0x48] sm:$0xf0]  ;;  %v504_v22 = vor.u32 %v606_v19, %v503_v18  ;;  %v495_v24 = vld [vmem:[#allocation5 + $0x30] sm:$0xf] }
  0x1a   :  { %v508_v23 = vor.u32 %v605_v20, %v505_v21  ;;  %v604_v25 = vld [vmem:[#allocation5 + $0x34] sm:$0xf0]  ;;  %v603_v26 = vld [vmem:[#allocation5 + $0x34] sm:$0xf]  ;;  %v497_v27 = vld [vmem:[#allocation5 + $0x38] sm:$0xf0] }
  0x1b   :  { %187 = vmatpush.bf16.msra.mxu0 %v520_v10  ;;  %v496_v28 = vor.u32 %v604_v25, %v495_v24  ;;  %v500_v29 = vor.u32 %v603_v26, %v497_v27  ;;  %v487_v30 = vld [vmem:[#allocation5 + $0x20] sm:$0xf]  ;;  %v602_v31 = vld [vmem:[#allocation5 + $0x24] sm:$0xf0]  ;;  %v601_v32 = vld [vmem:[#allocation5 + $0x24] sm:$0xf] }
  0x1c   :  { %201 = vmatpush.bf16.msra.mxu1 %v524_v11  ;;  %v489_v33 = vld [vmem:[#allocation5 + $0x28] sm:$0xf0]  ;;  %v488_v34 = vor.u32 %v602_v31, %v487_v30  ;;  %v479_v36 = vld [vmem:[#allocation5 + $0x10] sm:$0xf]  ;;  %v600_v37 = vld [vmem:[#allocation5 + $0x14] sm:$0xf0] }
  0x1d   :  { %v492_v35 = vor.u32 %v601_v32, %v489_v33  ;;  %v599_v38 = vld [vmem:[#allocation5 + $0x14] sm:$0xf]  ;;  %v481_v39 = vld [vmem:[#allocation5 + $0x18] sm:$0xf0]  ;;  %v480_v40 = vor.u32 %v600_v37, %v479_v36  ;;  %v471_v42 = vld [vmem:[#allocation5] sm:$0xf] }
  0x1e   :  { %v484_v41 = vor.u32 %v599_v38, %v481_v39  ;;  %v598_v43 = vld [vmem:[#allocation5 + $0x4] sm:$0xf0]  ;;  %v597_v44 = vld [vmem:[#allocation5 + $0x4] sm:$0xf]  ;;  %v473_v45 = vld [vmem:[#allocation5 + $0x8] sm:$0xf0] }
  0x1f   :  { %188 = vmatpush.bf16.msra.mxu0 %v512_v16  ;;  %v472_v46 = vor.u32 %v598_v43, %v471_v42  ;;  %v79_v47 = vld [vmem:[#allocation2] sm:$0xff]  ;;  %v80_v48 = vld [vmem:[#allocation2 + $0x8] sm:$0xff]  ;;  %v476_v49 = vor.u32 %v597_v44, %v473_v45  ;;  %v822_v51 = vld [vmem:[#allocation7] sm:$0x77]  ;;  %s778_s3 = smov [#allocation10]   ;;  %s454_s13 = sshll.u32 %s860_s4, 4  ;;  %s455_s13 = int_to_ptr.hbm [resolvable:$true] %s454_s13 }
  0x20   :  { %202 = vmatpush.bf16.msra.mxu1 %v516_v17  ;;  %v81_v50 = vpack.c.bf16 %v80_v48, %v79_v47  ;;  %v100_v52 = vperm.slane %v822_v51, 0  ;;  %v101_v53 = vperm.slane %v822_v51, 4  ;;  %v620_v20 = vld [vmem:[#allocation8 + $0x38] sm:$0xff]  ;;  %v618_v24 = vld [vmem:[#allocation8 + $0x28] sm:$0xff]  ;;  %v617_v26 = vld [vmem:[#allocation8 + $0x20] sm:$0xff]  ;;  %v264_v48 = vperm.slane %v822_v51, 1 }
  0x21   :  { %v628_v21 = vld [vmem:[#allocation8 + $0x78] sm:$0xff]  ;;  %418 = vmatpush.bf16.msra.mxu2 %v620_v20  ;;  %v626_v25 = vld [vmem:[#allocation8 + $0x68] sm:$0xff]  ;;  %v625_v27 = vld [vmem:[#allocation8 + $0x60] sm:$0xff]  ;;  %s452_s10 = sshll.u32 %s778_s3, 4  ;;  %s453_s10 = int_to_ptr.vmem [resolvable:$true] %s452_s10 }
  0x22   :  { %v104_v54 = vperm.slane %v100_v52, 0  ;;  %v105_v55 = vperm.slane %v101_v53, 0  ;;  %432 = vmatpush.bf16.msra.mxu3 %v628_v21  ;;  %v615_v30 = vld [vmem:[#allocation8 + $0x10] sm:$0xff]  ;;  %v614_v32 = vld [vmem:[#allocation8 + $0x8] sm:$0xff]  ;;  %v621_v36 = vld [vmem:[#allocation8 + $0x40] sm:$0xff] }
  0x23   :  { %189 = vmatpush.bf16.msra.mxu0 %v504_v22  ;;  %v619_v22 = vld [vmem:[#allocation8 + $0x30] sm:$0xff]  ;;  %v622_v33 = vld [vmem:[#allocation8 + $0x48] sm:$0xff] }
  0x24   :  { %203 = vmatpush.bf16.msra.mxu1 %v508_v23  ;;  %v627_v23 = vld [vmem:[#allocation8 + $0x70] sm:$0xff] }
  0x25   :  { %419 = vmatpush.bf16.msra.mxu2 %v619_v22  ;;  %v623_v31 = vld [vmem:[#allocation8 + $0x50] sm:$0xff] }
  0x26   :  { %433 = vmatpush.bf16.msra.mxu3 %v627_v23 }
  0x27   :  { %190 = vmatpush.bf16.msra.mxu0 %v496_v28  ;;  %v616_v28 = vld [vmem:[#allocation8 + $0x18] sm:$0xff] }
  0x28   :  { %204 = vmatpush.bf16.msra.mxu1 %v500_v29  ;;  %v624_v29 = vld [vmem:[#allocation8 + $0x58] sm:$0xff] }
  0x29   :  { %420 = vmatpush.bf16.msra.mxu2 %v618_v24 }
  0x2a   :  { %434 = vmatpush.bf16.msra.mxu3 %v626_v25 }
  0x2b   :  { %191 = vmatpush.bf16.msra.mxu0 %v488_v34 }
  0x2c   :  { %205 = vmatpush.bf16.msra.mxu1 %v492_v35  ;;  %v613_v35 = vld [vmem:[#allocation8] sm:$0xff] }
  0x2d   :  { %421 = vmatpush.bf16.msra.mxu2 %v617_v26 }
  0x2e   :  { %435 = vmatpush.bf16.msra.mxu3 %v625_v27 }
  0x2f   :  { %192 = vmatpush.bf16.msra.mxu0 %v480_v40 }
  0x30   :  { %206 = vmatpush.bf16.msra.mxu1 %v484_v41 }
  0x31   :  { %422 = vmatpush.bf16.msra.mxu2 %v616_v28 }
  0x32   :  { %436 = vmatpush.bf16.msra.mxu3 %v624_v29 }
  0x33   :  { %193 = vmatpush.bf16.msra.mxu0 %v472_v46 }
  0x34   :  { %207 = vmatpush.bf16.msra.mxu1 %v476_v49  ;;  %v265_v49 = vperm.slane %v822_v51, 5 }
  0x35   :  { %423 = vmatpush.bf16.msra.mxu2 %v615_v30 }
  0x36   :  { %194 = vmatmul.bf16.vlgmr.msra.gmra.mxu0 %v81_v50  ;;  %437 = vmatpush.bf16.msra.mxu3 %v623_v31 }
  0x37   :  { %208 = vmatmul.bf16.vlgmr.msra.gmra.mxu1 %v81_v50 }
  0x39   :  { %424 = vmatpush.bf16.msra.mxu2 %v614_v32 }
  0x3a   :  { %438 = vmatpush.bf16.msra.mxu3 %v622_v33 }
  0x3d   :  { %425 = vmatpush.bf16.msra.mxu2 %v613_v35 }
  0x3e   :  { %439 = vmatpush.bf16.msra.mxu3 %v621_v36 }
  0xb3   :  { %v195_v56 = vpop.f32.mrf.mxu0 }
  0xb4   :  { %v196_v57 = vadd.f32 %v195_v56, %v104_v54  ;;  %v209_v58 = vpop.f32.mrf.mxu1 }
  0xb5   :  { %v210_v59 = vadd.f32 %v209_v58, %v105_v55 }
  0xb6   :  { %v214_v60 = vmax.f32 %v196_v57, 0.0 }
  0xb7   :  { %v215_v61 = vmax.f32 %v210_v59, 0.0  ;;  %v278_v59 = vperm.slane %v822_v51, 2 }
  0xb9   :  { %v218_v62 = vadd.f32 %v215_v61, %v214_v60 }
  0xbb   :  { %219 = vadd.xlane.f32.xlu0 %v218_v62  ;;  %v197_v63 = vpop.f32.mrf.mxu0 }
  0xbc   :  { %v198_v0 = vadd.f32 %v197_v63, %v104_v54  ;;  %v211_v1 = vpop.f32.mrf.mxu1  ;;  %v268_v54 = vperm.slane %v264_v48, 1 }
  0xbd   :  { %v212_v2 = vadd.f32 %v211_v1, %v105_v55  ;;  %v269_v55 = vperm.slane %v265_v49, 1  ;;  %v282_v1 = vperm.slane %v278_v59, 2 }
  0xbe   :  { %v216_v3 = vmax.f32 %v198_v0, 0.0 }
  0xbf   :  { %v217_v4 = vmax.f32 %v212_v2, 0.0 }
  0xc1   :  { %v221_v5 = vadd.f32 %v217_v4, %v216_v3 }
  0xc3   :  { %222 = vadd.xlane.f32.xlu0 %v221_v5 }
 0x12e   :  { %v220_v6 = vpop.xlane.xlu0 %219 }
 0x12f   :  { %v224_v7 = vmul.f32 0.00390625, %v220_v6 }
 0x131   :  { %v826_v8 = vsub.f32 %v214_v60, %v224_v7  ;;  %v828_v9 = vsub.f32 %v215_v61, %v224_v7  ;;  %v279_v60 = vperm.slane %v822_v51, 6 }
 0x133   :  { %v230_v10 = vmul.f32 %v826_v8, %v826_v8  ;;  %v231_v11 = vmul.f32 %v828_v9, %v828_v9  ;;  %v283_v2 = vperm.slane %v279_v60, 2 }
 0x135   :  { %v234_v12 = vadd.f32 %v231_v11, %v230_v10 }
 0x136   :  { %v223_v13 = vpop.xlane.xlu0 %222 }
 0x137   :  { %v225_v14 = vmul.f32 0.00390625, %v223_v13  ;;  %235 = vadd.xlane.f32.xlu1 %v234_v12 }
 0x139   :  { %v834_v15 = vsub.f32 %v216_v3, %v225_v14  ;;  %v836_v16 = vsub.f32 %v217_v4, %v225_v14 }
 0x13b   :  { %v232_v17 = vmul.f32 %v834_v15, %v834_v15  ;;  %v233_v18 = vmul.f32 %v836_v16, %v836_v16 }
 0x13d   :  { %v237_v19 = vadd.f32 %v233_v18, %v232_v17 }
 0x13f   :  { %238 = vadd.xlane.f32.xlu1 %v237_v19 }
 0x1aa   :  { %v236_v34 = vpop.xlane.xlu1 %235 }
 0x1ab   :  { %v240_v37 = vmul.f32 0.00390625, %v236_v34 }
 0x1ad   :  { %v242_v38 = vadd.f32 1e-12, %v240_v37 }
 0x1af   :  { %638 = vrsqrt.f32 %v242_v38  ;;  %vm250_vm1 = vweird.f32 %v242_v38 }
 0x1b2   :  { %v239_v39 = vpop.xlane.xlu1 %238 }
 0x1b3   :  { %v241_v40 = vmul.f32 0.00390625, %v239_v39 }
 0x1b5   :  { %v639_v41 = vpop.eup %638  ;;  %v243_v42 = vadd.f32 1e-12, %v241_v40 }
 0x1b6   :  { %v245_v43 = vmul.f32 %v639_v41, %v242_v38  ;;  %vm251_vm0 = vweird.f32 %v639_v41 }
 0x1b7   :  { %640 = vrsqrt.f32 %v243_v42  ;;  %vm252_vm2 = vmor %vm250_vm1, %vm251_vm0  ;;  %vm260_vm4 = vweird.f32 %v243_v42 }
 0x1b8   :  { %v246_v44 = vmul.f32 %v639_v41, %v245_v43 }
 0x1ba   :  { %v247_v45 = vmul.f32 0.5, %v246_v44 }
 0x1bc   :  { %v248_v46 = vsub.f32 1.5, %v247_v45 }
 0x1bd   :  { %v641_v47 = vpop.eup %640 }
 0x1be   :  { %v249_v50 = vmul.f32 %v639_v41, %v248_v46  ;;  %v255_v52 = vmul.f32 %v641_v47, %v243_v42  ;;  %vm261_vm3 = vweird.f32 %v641_v47 }
 0x1bf   :  { %vm262_vm5 = vmor %vm260_vm4, %vm261_vm3 }
 0x1c0   :  { %v256_v53 = vmul.f32 %v641_v47, %v255_v52  ;;  %v253_v57 = vsel %vm252_vm2, %v639_v41, %v249_v50 }
 0x1c1   :  { %v270_v61 = vmul.f32 %v268_v54, %v253_v57  ;;  %v271_v62 = vmul.f32 %v269_v55, %v253_v57 }
 0x1c2   :  { %v257_v56 = vmul.f32 0.5, %v256_v53 }
 0x1c3   :  { %v274_v4 = vmul.f32 %v270_v61, %v826_v8  ;;  %v275_v6 = vmul.f32 %v271_v62, %v828_v9 }
 0x1c4   :  { %v258_v58 = vsub.f32 1.5, %v257_v56 }
 0x1c5   :  { %v284_v11 = vadd.f32 %v282_v1, %v274_v4  ;;  %v285_v12 = vadd.f32 %v283_v2, %v275_v6 }
 0x1c6   :  { %v259_v63 = vmul.f32 %v641_v47, %v258_v58 }
 0x1c8   :  { %v263_v0 = vsel %vm262_vm5, %v641_v47, %v259_v63 }
 0x1c9   :  { %v272_v3 = vmul.f32 %v268_v54, %v263_v0  ;;  %v273_v5 = vmul.f32 %v269_v55, %v263_v0 }
 0x1cb   :  { %v276_v7 = vmul.f32 %v272_v3, %v834_v15  ;;  %v277_v10 = vmul.f32 %v273_v5, %v836_v16 }
 0x1cd   :  { %v286_v51 = vadd.f32 %v282_v1, %v276_v7  ;;  %v287_v13 = vadd.f32 %v283_v2, %v277_v10 }
 0x1cf   :  { %v288_v14 = vpack.c.bf16 %v286_v51, %v284_v11  ;;  %v289_v17 = vpack.c.bf16 %v287_v13, %v285_v12 }
 0x1d1   :  { %426 = vmatmul.bf16.vlgmr.msra.gmra.mxu2 %v288_v14  ;;  %440 = vmatmul.bf16.vlgmr.msra.gmra.mxu3 %v289_v17 }
 0x254   :  { %v427_v18 = vpop.f32.mrf.mxu2  ;;  %v441_v19 = vpop.f32.mrf.mxu3 }
 0x255   :  { %v442_v20 = vadd.f32 %v441_v19, %v427_v18 }
 0x257   :  { %446 = vst [vmem:[#allocation10] sm:$0xff] %v442_v20 }
 0x25c   :  { %v429_v8 = vpop.f32.mrf.mxu2  ;;  %v443_v9 = vpop.f32.mrf.mxu3 }
 0x25d   :  { %v444_v15 = vadd.f32 %v443_v9, %v429_v8 }
 0x25f   :  { %447 = vst [vmem:[#allocation10 + $0x8] sm:$0xff] %v444_v15 }
 0x260   :  { %460 = dma.vmem_to_hbm [thread:$0]  %s453_s10, 256, %s455_s13, [#allocation4], %s771_s23, %s771_s23, %s772_s24  }
 0x261   :  { %768 = dma.done.wait [#allocation4], 256  }
 0x262   :  { %769 = vsyncadd [#allocation4], 4294967040 }
 0x263   :  { %465 = vsyncpa [#allocation3], 1 }
 0x264   :  { %466 = vsyncpa [#allocation6], 1 }
 0x265   :  { %467 = vsyncpa [#allocation9], 1 }
 0x266   :  { %468 = vsyncpa [#allocation4], 1 }

</bundles_post_ra>
